<compile_context>
chip_gen: v6e
topology: v6e:2x2x1
jax: 0.10.0
libtpu: 0.0.40
codegen_flags: <defaults>
</compile_context>

<pallas_src>
import math

import jax
import jax.numpy as jnp
from jax.experimental import pallas as pl
from jax.experimental.pallas import tpu as pltpu

_LANES = 128


def _round_up(n, m):
    return ((n + m - 1) // m) * m


def _mul_cast_kernel(x_ref, y_ref, o_ref):
    # Promote-then-compute matches torch type promotion; the vcvt is free
    # filler under the DMA bottleneck.
    x = x_ref[...].astype(o_ref.dtype)
    y = y_ref[...].astype(o_ref.dtype)
    xy = x * y                      # x*y == y*x, so forward == xy + xy
    o_ref[...] = xy + xy


def _mul_cast_scalar_kernel(s_ref, y_ref, o_ref):
    # s_ref: (1,) SMEM scalar = the single-element operand.
    y = y_ref[...].astype(o_ref.dtype)
    sy = s_ref[0].astype(o_ref.dtype) * y
    o_ref[...] = sy + sy


def mul_cast(x, y, *, max_tile_rows=4096):
    """x * y + y * x with numpy broadcasting + dtype promotion, in Pallas.

    max_tile_rows: rows (of 128 lanes) per grid step. 4096 -> 2 MiB f32 per
    array per step (~85% HBM roofline, ~10 MiB double-buffered VMEM).  May be
    raised to 8192 on v7x to further amortize per-step overhead.
    """
    x = jnp.asarray(x)
    y = jnp.asarray(y)
    out_dtype = jnp.promote_types(x.dtype, y.dtype)
    out_shape = tuple(jnp.broadcast_shapes(x.shape, y.shape))
    total = math.prod(out_shape) if out_shape else 1

    if total == 0:
        return jnp.zeros(out_shape, out_dtype)

    rows = pl.cdiv(total, _LANES)
    # Cap tiles at half the rows (multiple of 16 for bf16 sublane packing) so
    # both v7x TensorCores receive blocks; fall back to a single block equal
    # to the full array dims (always layout-legal) when that covers it all.
    tile_rows = min(max_tile_rows, _round_up(pl.cdiv(rows, 2), 16))
    if tile_rows >= rows:
        tile_rows = rows
    grid = (pl.cdiv(rows, tile_rows),)
    pad = rows * _LANES - total          # < 128 elements, never a full tile

    def to_slab(a):
        flat = a.reshape(-1)
        if pad:
            flat = jnp.pad(flat, (0, pad))
        return flat.reshape(rows, _LANES)

    tensor_spec = pl.BlockSpec((tile_rows, _LANES), lambda i: (i, 0))
    out_spec = pl.BlockSpec((tile_rows, _LANES), lambda i: (i, 0))
    cparams = pltpu.CompilerParams(dimension_semantics=("parallel",))
    out_sds = jax.ShapeDtypeStruct((rows, _LANES), out_dtype)

    x_is_scalar = x.size == 1 and y.size == total
    y_is_scalar = y.size == 1 and x.size == total

    if x_is_scalar or y_is_scalar:
        # Single-element operand: keep it in SMEM and broadcast in-kernel
        # (no full-size HBM copy streamed). Multiplication commutes, so the
        # operand order does not matter.
        scalar, tensor = (x, y) if x_is_scalar else (y, x)
        smem_dtype = (out_dtype
                      if jnp.dtype(out_dtype).itemsize >= 4 else jnp.float32)
        s = scalar.reshape((1,)).astype(smem_dtype)
        out2d = pl.pallas_call(
            _mul_cast_scalar_kernel,
            out_shape=out_sds,
            grid=grid,
            in_specs=[
                pl.BlockSpec(memory_space=pltpu.MemorySpace.SMEM),
                tensor_spec,
            ],
            out_specs=out_spec,
            compiler_params=cparams,
        )(s, to_slab(tensor))
    else:
        # TODO(synk): per-channel / partially-broadcast parameters are still
        # materialized full-size here; a constant-index BlockSpec on the small
        # operand would avoid that extra HBM read traffic.
        xb = x if x.shape == out_shape else jnp.broadcast_to(x, out_shape)
        yb = y if y.shape == out_shape else jnp.broadcast_to(y, out_shape)
        out2d = pl.pallas_call(
            _mul_cast_kernel,
            out_shape=out_sds,
            grid=grid,
            in_specs=[tensor_spec, tensor_spec],
            out_specs=out_spec,
            compiler_params=cparams,
        )(to_slab(xb), to_slab(yb))

    flat = out2d.reshape(-1)
    if pad:
        flat = flat[:total]
    return flat.reshape(out_shape)


if __name__ == "__main__":
    key = jax.random.PRNGKey(0)
    kx, ky, ks = jax.random.split(key, 3)

    # Module's constructor-held tensor x and forward input y (NCHW).
    # Differing dtypes exercise the "cast" part of MulCast.
    x = jax.random.normal(kx, (2, 4, 16, 16), dtype=jnp.float32)
    y = jax.random.normal(ky, (2, 4, 16, 16), dtype=jnp.bfloat16)

    out = mul_cast(x, y)
    jax.block_until_ready(out)

    yf = y.astype(jnp.float32)
    ref = x * yf + yf * x
    assert out.shape == ref.shape
    assert out.dtype == ref.dtype
    assert jnp.allclose(out, ref, atol=1e-5, rtol=1e-5)

    # Scalar module parameter x: exercises the SMEM (no-HBM-broadcast) path.
    xs = jax.random.normal(ks, (), dtype=jnp.float32)
    out_s = mul_cast(xs, y)
    jax.block_until_ready(out_s)
    ref_s = xs * yf + yf * xs
    assert out_s.shape == ref_s.shape
    assert out_s.dtype == ref_s.dtype
    assert jnp.allclose(out_s, ref_s, atol=1e-5, rtol=1e-5)

    print("KERNEL_OK")
</pallas_src>

<mosaic_0001>
module attributes {stable_mosaic.version = 11 : i64} {
  func.func @_mul_cast_kernel(%arg0: i32, %arg1: memref<16x128xf32, #tpu.memory_space<vmem>>, %arg2: memref<16x128xbf16, #tpu.memory_space<vmem>>, %arg3: memref<16x128xf32, #tpu.memory_space<vmem>>) attributes {dimension_semantics = [#tpu.dimension_semantics<parallel>], iteration_bounds = array<i64: 1>, scalar_prefetch = 0 : i64, scratch_operands = 0 : i64, tpu.core_type = #tpu.core_type<tc>, window_params = [{transform_indices = @transform_0, window_bounds = array<i64: 16, 128>}, {transform_indices = @transform_1, window_bounds = array<i64: 16, 128>}, {transform_indices = @transform_2, window_bounds = array<i64: 16, 128>}]} {
    %c0 = arith.constant 0 : index
    %c0_0 = arith.constant 0 : index
    %0 = vector.load %arg1[%c0, %c0_0] : memref<16x128xf32, #tpu.memory_space<vmem>>, vector<16x128xf32>
    %c0_1 = arith.constant 0 : index
    %c0_2 = arith.constant 0 : index
    %1 = vector.load %arg2[%c0_1, %c0_2] : memref<16x128xbf16, #tpu.memory_space<vmem>>, vector<16x128xbf16>
    %2 = arith.extf %1 : vector<16x128xbf16> to vector<16x128xf32>
    %3 = arith.mulf %0, %2 : vector<16x128xf32>
    %4 = arith.addf %3, %3 : vector<16x128xf32>
    %c0_3 = arith.constant 0 : index
    %c0_4 = arith.constant 0 : index
    %5 = vector.load %arg3[%c0_3, %c0_4] : memref<16x128xf32, #tpu.memory_space<vmem>>, vector<16x128xf32>
    tpu.vector_store %arg3[%c0_3, %c0_4], %4 {strides = array<i32>} : memref<16x128xf32, #tpu.memory_space<vmem>>, vector<16x128xf32>,
    return
  }
  func.func @transform_0(%arg0: i32) -> (i32, i32) {
    %c0_i32 = arith.constant 0 : i32
    %c0_i32_0 = arith.constant 0 : i32
    return %arg0, %c0_i32 : i32, i32
  }
  func.func @transform_1(%arg0: i32) -> (i32, i32) {
    %c0_i32 = arith.constant 0 : i32
    %c0_i32_0 = arith.constant 0 : i32
    return %arg0, %c0_i32 : i32, i32
  }
  func.func @transform_2(%arg0: i32) -> (i32, i32) {
    %c0_i32 = arith.constant 0 : i32
    %c0_i32_0 = arith.constant 0 : i32
    return %arg0, %c0_i32 : i32, i32
  }
}

</mosaic_0001>

<bundles_post_ra>
// kernel: tpu_custom_call.1
= control target key start
LH: loop header
LB: loop body
LE: loop exit
PB: predicated region body
PF: predicated region fallthrough
CT: control target
= control target key end

     0   :  { %7 = vsyncpa [#allocation3], 0  ;;  %s184_s0 = inlined_call_operand.hbm [shape: f32[16,128], index: 0, kind: input, shape index: {}]   ;;  %s185_s1 = inlined_call_operand.hbm [shape: bf16[16,128], index: 1, kind: input, shape index: {}]   ;;  %s186_s2 = inlined_call_operand.hbm [shape: f32[16,128], index: 2, kind: output, shape index: {}]  }
   0x1   :  { %8 = vsyncpa [#allocation6], 0 }
   0x2   :  { %9 = vsyncpa [#allocation4], 0  ;;  %s147_s9 = smov [#allocation2]  }
   0x3   :  { %s15_s10 = sshll.u32 %s147_s9, 4  ;;  %s16_s10 = int_to_ptr.vmem [resolvable:$true] %s15_s10 }
   0x4   :  { %s89_s11 = scalar_lea.vmem %s16_s10, 256  ;;  %p94_p1 = scmp.lt.s32.totalorder %s16_s10, %s16_s10 }
   0x5   :  { %p90_p0 = scmp.ne.s32.totalorder %s16_s10, %s89_s11  ;;  %p95_p2 = scmp.lt.s32.totalorder %s89_s11, %s89_s11 }
   0x7   :  { %p96_p3 = por %p95_p2, %p94_p1 }
   0x9   :  { %p97_p4 = pnand %p96_p3, %p90_p0 }
   0xb   :  { %100 = shalt.err (!%p97_p4)
}
   0xc   :  { %s148_s12 = smov 128   ;;  %s149_s13 = smov 8  }
   0xd   :  { %21 = dma.hbm_to_vmem [thread:$0]  %s184_s0, 256, %s16_s10, [#allocation3], %s148_s12, %s148_s12, %s149_s13  }
   0xe   :  { %s150_s16 = smov [#allocation5]  }
   0xf   :  { %s27_s17 = sshll.u32 %s150_s16, 4  ;;  %s28_s17 = int_to_ptr.vmem [resolvable:$true] %s27_s17 }
  0x10   :  { %s109_s18 = scalar_lea.vmem %s28_s17, 128  ;;  %p114_p6 = scmp.lt.s32.totalorder %s28_s17, %s28_s17 }
  0x11   :  { %p110_p5 = scmp.ne.s32.totalorder %s28_s17, %s109_s18  ;;  %p115_p7 = scmp.lt.s32.totalorder %s109_s18, %s109_s18 }
  0x13   :  { %p116_p8 = por %p115_p7, %p114_p6 }
  0x15   :  { %p117_p9 = pnand %p116_p8, %p110_p5 }
  0x17   :  { %120 = shalt.err (!%p117_p9)
}
  0x18   :  { %s151_s19 = smov 64   ;;  %s152_s20 = smov 4  }
  0x19   :  { %33 = dma.hbm_to_vmem [thread:$0]  %s185_s1, 128, %s28_s17, [#allocation6], %s151_s19, %s151_s19, %s152_s20  }
  0x1a   :  { %141 = dma.done.wait [#allocation3], 256  }
  0x1b   :  { %142 = vsyncadd [#allocation3], 4294967040 }
  0x1c   :  { %143 = dma.done.wait [#allocation6], 128  }
  0x1d   :  { %144 = vsyncadd [#allocation6], 4294967168  ;;  %v40_v0 = vld [vmem:[#allocation2] sm:$0xff]  ;;  %v71_v1 = vld [vmem:[#allocation5] sm:$0xff]   ;;  %s153_s0 = smov [#allocation7]  }
  0x1e   :  { %v41_v2 = vld [vmem:[#allocation2 + $0x8] sm:$0xff]  ;;  %v72_v3 = vunpack.c.l.bf16 %v71_v1  ;;  %v73_v4 = vunpack.c.h.bf16 %v71_v1  ;;  %s57_s23 = sshll.u32 %s153_s0, 4  ;;  %s58_s23 = int_to_ptr.vmem [resolvable:$true] %s57_s23 }
  0x1f   :  { %s121_s24 = scalar_lea.vmem %s58_s23, 256  ;;  %p126_p11 = scmp.lt.s32.totalorder %s58_s23, %s58_s23 }
  0x20   :  { %v46_v5 = vmul.f32 %v72_v3, %v40_v0  ;;  %v47_v6 = vmul.f32 %v73_v4, %v41_v2  ;;  %p122_p10 = scmp.ne.s32.totalorder %s58_s23, %s121_s24  ;;  %p127_p12 = scmp.lt.s32.totalorder %s121_s24, %s121_s24 }
  0x22   :  { %v48_v7 = vadd.f32 %v46_v5, %v46_v5  ;;  %v49_v8 = vadd.f32 %v47_v6, %v47_v6  ;;  %p128_p13 = por %p127_p12, %p126_p11 }
  0x24   :  { %50 = vst [vmem:[#allocation7] sm:$0xff] %v48_v7  ;;  %51 = vst [vmem:[#allocation7 + $0x8] sm:$0xff] %v49_v8  ;;  %p129_p0 = pnand %p128_p13, %p122_p10 }
  0x26   :  { %132 = shalt.err (!%p129_p0)
}
  0x27   :  { %63 = dma.vmem_to_hbm [thread:$0]  %s58_s23, 256, %s186_s2, [#allocation4], %s148_s12, %s148_s12, %s149_s13  }
  0x28   :  { %145 = dma.done.wait [#allocation4], 256  }
  0x29   :  { %146 = vsyncadd [#allocation4], 4294967040 }
  0x2a   :  { %67 = vsyncpa [#allocation3], 1 }
  0x2b   :  { %68 = vsyncpa [#allocation6], 1 }
  0x2c   :  { %69 = vsyncpa [#allocation4], 1 }

</bundles_post_ra>
